<compile_context>
chip_gen: v6e
topology: v6e:2x2x1
jax: 0.10.0
libtpu: 0.0.40
codegen_flags: <defaults>
</compile_context>

<pallas_src>
import jax
import jax.numpy as jnp
from jax import lax
from jax.experimental import pallas as pl
from jax.experimental.pallas import tpu as pltpu


# ---------------------------------------------------------------------------
# Device-aware sizing helpers
# ---------------------------------------------------------------------------
_HW_CACHE = {}


def _vmem_limit_bytes():
    if "limit" not in _HW_CACHE:
        try:
            cap = int(pltpu.get_tpu_info().vmem_capacity_bytes)
        except Exception:
            cap = 64 * 1024 * 1024          # conservative (v7x-sized) fallback
        _HW_CACHE["limit"] = min(int(cap * 0.75), 100 * 1024 * 1024)
    return _HW_CACHE["limit"]


def _tile_budget_bytes():
    # Budget for one grid step's double-buffered blocks + live temporaries.
    return int(_vmem_limit_bytes() * 0.6)


def _store_dtype():
    # bf16 storage of features / warped volumes on v6e/v7x; f32 on v5e
    # (no bf16 VPU -> conversion eats the win) and on unknown chips.
    if "store_dt" not in _HW_CACHE:
        dt = jnp.float32
        try:
            kind = jax.devices()[0].device_kind.lower()
            if "v6" in kind or "v7" in kind:
                dt = jnp.bfloat16
        except Exception:
            pass
        _HW_CACHE["store_dt"] = dt
    return _HW_CACHE["store_dt"]


def _pad_sublane(n, dtype):
    """Round a second-minor block dim up to its VMEM sublane multiple."""
    itemsize = jnp.dtype(dtype).itemsize
    mult = max(8, 32 // max(itemsize, 1))       # 8 for f32, 16 for bf16
    return ((n + mult - 1) // mult) * mult


def _largest_fitting_lane_tile(HW, per_lane_bytes, cap=4096):
    """Largest multiple-of-128 lane tile (<= cap) that fits the VMEM budget.

    If HW < 128 the whole row is one (full-dim) tile.  The grid uses pl.cdiv,
    so the tile does NOT need to divide HW (Pallas masks the ragged edge).
    """
    if HW <= 128:
        return HW
    budget = _tile_budget_bytes()
    top = min(HW, cap)
    top -= top % 128
    top = max(top, 128)
    tn = top
    while tn > 128 and per_lane_bytes * tn > budget:
        tn -= 128
    return tn


# ---------------------------------------------------------------------------
# Kernel 1 (fused): multi-view variance -> 1x1x1 channel reduce -> softmax over
# depth -> depth regression + photometric confidence.
#
#   ref feature : (B, C, HW)        broadcast over depth in-kernel
#   warped vols : num_src x (B, D, C, HW)   (channel dim on the sublane axis)
#   cr weight   : (C, 1) f32        1x1x1 conv C->1 (bias dropped: softmax over
#                                   depth is shift-invariant, so it cancels)
#   depth vals  : (B, D, 1) if spatially constant else (B, D, HW)
#   outputs     : depth (B, 1, HW) f32, confidence (B, 1, HW) f32
# ---------------------------------------------------------------------------
def _make_fused_cost_kernel(num_src, num_views):
    inv = 1.0 / float(num_views)

    def kernel(*refs):
        ref_ref, dv_ref, w_ref = refs[0], refs[1], refs[2]
        src_refs = refs[3:3 + num_src]
        depth_ref = refs[3 + num_src]
        conf_ref = refs[4 + num_src]

        # --- variance over views (ref broadcast over depth in-register) -----
        x = src_refs[0][0].astype(jnp.float32)           # (D, C, tn)
        s = x
        sq = x * x
        for r in src_refs[1:]:
            x = r[0].astype(jnp.float32)
            s = s + x
            sq = sq + x * x
        ref = ref_ref[0].astype(jnp.float32)[None]       # (1, C, tn)
        s = s + ref
        sq = sq + ref * ref
        var = sq * inv - (s * inv) ** 2                  # (D, C, tn)

        # --- 1x1x1 cost regularization stand-in: channel reduce C -> 1 ------
        w = w_ref[...].astype(jnp.float32)               # (C, 1)
        cost = jnp.sum(var * w[None], axis=1)            # (D, tn)

        # --- softmax over depth + regression + 4-tap window confidence ------
        D = cost.shape[0]
        m = jnp.max(cost, axis=0, keepdims=True)
        e = jnp.exp(cost - m)
        ssum = jnp.sum(e, axis=0, keepdims=True)
        r0 = pl.reciprocal(ssum, approx=True)            # EUP slot
        inv_s = r0 * (2.0 - ssum * r0)                   # one Newton step

        dv = dv_ref[0].astype(jnp.float32)               # (D, tn) or (D, 1)
        depth = jnp.sum(e * dv, axis=0, keepdims=True) * inv_s      # (1, tn)

        d_ii = lax.broadcasted_iota(jnp.int32, e.shape, 0)
        idx_f = jnp.sum(e * d_ii.astype(jnp.float32), axis=0, keepdims=True) * inv_s
        idx = jnp.clip(jnp.floor(idx_f), 0.0, float(D - 1)).astype(jnp.int32)
        # sum4[idx] == p[idx-1] + p[idx] + p[idx+1] + p[idx+2] (zero padded),
        # matching F.pad(1,2) + avg_pool3d(4,1,1)*4 + gather in PyTorch.
        win = (d_ii >= idx - 1) & (d_ii <= idx + 2)
        conf = jnp.sum(jnp.where(win, e, 0.0), axis=0, keepdims=True) * inv_s

        depth_ref[0] = depth
        conf_ref[0] = conf

    return kernel


def _pick_fused_tile(D, C, HW, num_src, src_dtype, ref_dtype, dv_const):
    src_is = jnp.dtype(src_dtype).itemsize
    ref_is = jnp.dtype(ref_dtype).itemsize
    c_src = _pad_sublane(C, src_dtype)
    c_ref = _pad_sublane(C, ref_dtype)
    c_f32 = _pad_sublane(C, jnp.float32)
    d_f32 = _pad_sublane(D, jnp.float32)
    per_lane = (2 * num_src * D * c_src * src_is        # src blocks, dbl-buffered
                + 2 * c_ref * ref_is                    # ref feature block
                + (0 if dv_const else 2 * d_f32 * 4)    # depth-values block
                + 2 * 2 * 8 * 4                         # two (1, tn) outputs
                + (4 * D * c_f32 + 8 * d_f32) * 4)      # live f32 temporaries
    return _largest_fitting_lane_tile(HW, per_lane, cap=4096)


def fused_cost_depth(ref_feat, warped_vols, cr_w, dv, dv_const):
    """ref_feat: (B, C, H, W); warped_vols: list of (B, D, C, H*W);
    cr_w: (C, 1) f32; dv: (B, D, 1) if dv_const else (B, D, H*W)."""
    assert len(warped_vols) >= 1
    B, C, H, W = ref_feat.shape
    HW = H * W
    D = warped_vols[0].shape[1]
    num_src = len(warped_vols)
    num_views = num_src + 1

    ref2 = ref_feat.reshape(B, C, HW)
    src_dt = warped_vols[0].dtype

    tn = _pick_fused_tile(D, C, HW, num_src, src_dt, ref2.dtype, dv_const)
    n_hw = pl.cdiv(HW, tn)
    grid = (n_hw, B)                       # HW axis leading + parallel (megacore)

    vol_spec = pl.BlockSpec((1, D, C, tn), lambda j, b: (b, 0, 0, j))
    ref_spec = pl.BlockSpec((1, C, tn), lambda j, b: (b, 0, j))
    w_spec = pl.BlockSpec((C, 1), lambda j, b: (0, 0))
    if dv_const:
        dv_spec = pl.BlockSpec((1, D, 1), lambda j, b: (b, 0, 0))
    else:
        dv_spec = pl.BlockSpec((1, D, tn), lambda j, b: (b, 0, j))
    out_spec = pl.BlockSpec((1, 1, tn), lambda j, b: (b, 0, j))

    src_is = jnp.dtype(src_dt).itemsize
    ref_is = jnp.dtype(ref2.dtype).itemsize
    dv_elems = B * D * (1 if dv_const else HW)
    bytes_accessed = int(num_src * B * D * C * HW * src_is
                         + B * C * HW * ref_is
                         + dv_elems * 4
                         + 2 * B * HW * 4
                         + C * 4)
    flops = int(B * D * HW * (C * (3 * num_src + 10) + 14))
    transcendentals = int(B * D * HW + B * HW)

    depth, conf = pl.pallas_call(
        _make_fused_cost_kernel(num_src, num_views),
        out_shape=(jax.ShapeDtypeStruct((B, 1, HW), jnp.float32),
                   jax.ShapeDtypeStruct((B, 1, HW), jnp.float32)),
        grid=grid,
        in_specs=[ref_spec, dv_spec, w_spec] + [vol_spec] * num_src,
        out_specs=(out_spec, out_spec),
        compiler_params=pltpu.CompilerParams(
            dimension_semantics=("parallel", "parallel"),
            vmem_limit_bytes=_vmem_limit_bytes()),
        cost_estimate=pl.CostEstimate(flops=flops,
                                      transcendentals=transcendentals,
                                      bytes_accessed=bytes_accessed),
    )(ref2, dv, cr_w, *warped_vols)

    return depth.reshape(B, H, W), conf.reshape(B, H, W)


# ---------------------------------------------------------------------------
# Kernel 2: channel matmul (1x1 conv over channels) with fused ReLU.
#   w: (Cout, Cin), b: (Cout, 1), x: (Cin, N) -> (Cout, N), lane-tiled over N
#   with a pl.cdiv grid (ragged edge masked by Pallas).
# ---------------------------------------------------------------------------
def _make_chan_matmul_kernel(relu):
    def kernel(w_ref, b_ref, x_ref, o_ref):
        y = jnp.dot(w_ref[...], x_ref[...],
                    preferred_element_type=jnp.float32) + b_ref[...]
        if relu:
            y = jnp.maximum(y, 0.0)
        o_ref[...] = y.astype(o_ref.dtype)
    return kernel


def _pick_chan_tile(Cin, Cout, N, out_dtype):
    out_is = jnp.dtype(out_dtype).itemsize
    per_lane = (2 * _pad_sublane(Cin, jnp.float32) * 4
                + 2 * _pad_sublane(Cout, out_dtype) * out_is
                + _pad_sublane(Cout, jnp.float32) * 4)
    return _largest_fitting_lane_tile(N, per_lane, cap=8192)


def chan_matmul(w, b, x, relu=False, out_dtype=jnp.float32):
    Cout, Cin = w.shape
    N = x.shape[1]
    tn = _pick_chan_tile(Cin, Cout, N, out_dtype)
    grid = (pl.cdiv(N, tn),)

    bytes_accessed = int(4 * (Cin * N + Cout * Cin + Cout)
                         + jnp.dtype(out_dtype).itemsize * Cout * N)
    flops = int(2 * Cout * Cin * N)

    return pl.pallas_call(
        _make_chan_matmul_kernel(relu),
        out_shape=jax.ShapeDtypeStruct((Cout, N), out_dtype),
        grid=grid,
        in_specs=[pl.BlockSpec((Cout, Cin), lambda i: (0, 0)),
                  pl.BlockSpec((Cout, 1), lambda i: (0, 0)),
                  pl.BlockSpec((Cin, tn), lambda i: (0, i))],
        out_specs=pl.BlockSpec((Cout, tn), lambda i: (0, i)),
        compiler_params=pltpu.CompilerParams(
            dimension_semantics=("parallel",),
            vmem_limit_bytes=_vmem_limit_bytes()),
        cost_estimate=pl.CostEstimate(flops=flops, transcendentals=0,
                                      bytes_accessed=bytes_accessed),
    )(w, b, x)


# ---------------------------------------------------------------------------
# Plain-JAX glue: bilinear grid sample (zero padding, align_corners=False).
# Produces the warped volume directly in (B, D, C, P) layout so the channel
# dim lands on the sublane axis of the fused Pallas kernel.
# ---------------------------------------------------------------------------
def grid_sample_zeros(img, gx, gy):
    # img: (B, C, H, W); gx, gy: (B, D, P) normalized coords in [-1, 1]
    # TODO(synk): data-dependent bilinear gather has no clean Pallas/TPU
    # equivalent without a manual DMA-gather kernel; kept in plain JAX.
    B, C, H, W = img.shape
    x = ((gx + 1.0) * W - 1.0) / 2.0
    y = ((gy + 1.0) * H - 1.0) / 2.0
    x0 = jnp.floor(x)
    y0 = jnp.floor(y)
    x1 = x0 + 1.0
    y1 = y0 + 1.0
    wx1 = x - x0
    wx0 = 1.0 - wx1
    wy1 = y - y0
    wy0 = 1.0 - wy1

    gather = jax.vmap(jax.vmap(lambda im, yy, xx: im[:, yy, xx],
                               in_axes=(None, 0, 0)),
                      in_axes=(0, 0, 0))          # -> (B, D, C, P)

    def sample(xi, yi):
        valid = ((xi >= 0) & (xi <= W - 1) & (yi >= 0) & (yi <= H - 1))
        xi_c = jnp.clip(xi, 0, W - 1).astype(jnp.int32)
        yi_c = jnp.clip(yi, 0, H - 1).astype(jnp.int32)
        vals = gather(img, yi_c, xi_c)            # (B, D, C, P)
        return vals * valid[:, :, None, :].astype(vals.dtype)

    return (sample(x0, y0) * (wx0 * wy0)[:, :, None, :]
            + sample(x1, y0) * (wx1 * wy0)[:, :, None, :]
            + sample(x0, y1) * (wx0 * wy1)[:, :, None, :]
            + sample(x1, y1) * (wx1 * wy1)[:, :, None, :])


def homo_warping(src_fea, src_proj, ref_proj, depth_values):
    # src_fea: (B, C, H, W); src_proj/ref_proj: (B, 4, 4)
    # depth_values: (B, D, H, W) -> warped (B, D, C, H*W)
    B, C, H, W = src_fea.shape
    D = depth_values.shape[1]
    proj = jnp.matmul(src_proj, jnp.linalg.inv(ref_proj))
    rot = proj[:, :3, :3]
    trans = proj[:, :3, 3:4]
    y, x = jnp.meshgrid(jnp.arange(H, dtype=jnp.float32),
                        jnp.arange(W, dtype=jnp.float32), indexing="ij")
    xyz = jnp.stack([x.reshape(-1), y.reshape(-1),
                     jnp.ones(H * W, jnp.float32)], axis=0)       # (3, HW)
    rot_xyz = jnp.einsum("bij,jk->bik", rot, xyz)                 # (B, 3, HW)
    rot_depth_xyz = rot_xyz[:, :, None, :] * depth_values.reshape(B, 1, D, H * W)
    proj_xyz = rot_depth_xyz + trans[:, :, :, None]               # (B, 3, D, HW)
    proj_xy = proj_xyz[:, :2] / proj_xyz[:, 2:3]
    gx = proj_xy[:, 0] / ((W - 1) / 2) - 1.0                      # (B, D, HW)
    gy = proj_xy[:, 1] / ((H - 1) / 2) - 1.0
    return grid_sample_zeros(src_fea, gx, gy)                     # (B, D, C, HW)


def get_depth_range_samples(cur_depth, ndepth, depth_interval_pixel, shape,
                            max_depth, min_depth):
    B, H, W = shape
    if cur_depth.ndim == 2:        # (B, D) initial hypotheses
        cur_depth_min = cur_depth[:, 0]
        cur_depth_max = cur_depth[:, -1]
        new_interval = (cur_depth_max - cur_depth_min) / (ndepth - 1)
        samples = (cur_depth_min[:, None]
                   + jnp.arange(ndepth, dtype=jnp.float32)[None, :] * new_interval[:, None])
        samples = jnp.broadcast_to(samples[:, :, None, None], (B, ndepth, H, W))
    else:                          # (B, H, W) per-pixel depth from previous stage
        cur_depth_min = cur_depth - ndepth / 2 * depth_interval_pixel
        cur_depth_max = cur_depth + ndepth / 2 * depth_interval_pixel
        new_interval = (cur_depth_max - cur_depth_min) / (ndepth - 1)
        samples = (cur_depth_min[:, None]
                   + jnp.arange(ndepth, dtype=jnp.float32)[None, :, None, None]
                   * new_interval[:, None])
    return samples


# ---------------------------------------------------------------------------
# CascadeMVSNet
# ---------------------------------------------------------------------------
class CascadeMVSNetPallas:
    def __init__(self, key, ndepths=(8, 4, 4), depth_intervals_ratio=(4, 2, 1)):
        self.ndepths = list(ndepths)
        self.depth_intervals_ratio = list(depth_intervals_ratio)
        self.num_stage = len(ndepths)
        self.stage_scales = [4.0, 2.0, 1.0][:self.num_stage]
        self.feat_channels = [32, 16, 8][:self.num_stage]   # FeatureNet(fpn) out chans
        self.store_dtype = _store_dtype()
        keys = jax.random.split(key, 2 * self.num_stage)
        # TODO(synk): FeatureNet (2-D conv FPN) and CostRegNet (3-D conv U-Net)
        # definitions are not part of the provided module; they are replaced by
        # deterministic 1x1(x1)-conv stand-ins whose channel matmuls run in
        # Pallas (the cost-reg one is fused into the cost/softmax kernel).
        self.feat_w = [0.1 * jax.random.normal(keys[i], (c, 3), jnp.float32)
                      for i, c in enumerate(self.feat_channels)]
        self.feat_b = [jnp.zeros((c, 1), jnp.float32) for c in self.feat_channels]
        # Cost-reg 1x1x1 conv C -> 1; its bias is dropped (softmax over depth is
        # shift-invariant, so it has no effect on depth / confidence).
        self.cr_w = [0.1 * jax.random.normal(keys[self.num_stage + i], (c, 1), jnp.float32)
                     for i, c in enumerate(self.feat_channels)]

    # ---- feature extraction stand-in -------------------------------------
    def feature(self, img):
        B, C3, H, W = img.shape
        feats = {}
        for s in range(self.num_stage):
            scale = int(self.stage_scales[s])
            h, w = H // scale, W // scale
            pooled = img.reshape(B, C3, h, scale, w, scale).mean(axis=(3, 5))
            x = pooled.transpose(1, 0, 2, 3).reshape(C3, B * h * w)
            f = chan_matmul(self.feat_w[s], self.feat_b[s], x, relu=True,
                            out_dtype=self.store_dtype)
            feats[f"stage{s + 1}"] = (f.reshape(self.feat_channels[s], B, h, w)
                                      .transpose(1, 0, 2, 3))
        return feats

    # ---- DepthNet (eval) ---------------------------------------------------
    def depth_net(self, features, proj_matrices, dv_full, dv_reg, dv_const,
                  num_depth, stage_idx):
        num_views = len(features)
        B, C, H, W = features[0].shape
        ref_feature, src_features = features[0], features[1:]
        proj_list = [proj_matrices[:, i] for i in range(num_views)]
        ref_proj, src_projs = proj_list[0], proj_list[1:]

        def compose(proj):       # proj: (B, 2, 4, 4) -> composed 4x4
            new = proj[:, 0]
            top = jnp.matmul(proj[:, 1, :3, :3], proj[:, 0, :3, :4])
            return new.at[:, :3, :4].set(top)

        ref_proj_new = compose(ref_proj)
        src_projs_new = [compose(src_projs[i]) for i in range(num_views - 1)]

        # Warped feature volumes in (B, D, C, HW) layout (channel on sublanes),
        # stored in bf16 on v6e/v7x, f32 on v5e.  No stacked HBM copy.
        store_dt = self.store_dtype
        warped_vols = [
            homo_warping(src_features[i], src_projs_new[i], ref_proj_new, dv_full)
            .astype(store_dt)
            for i in range(num_views - 1)]

        # NOTE: the PyTorch reference also fills an img_feat tensor (warped
        # source images + variance) that is never used nor returned; it is
        # intentionally not materialized here.
        depth, photometric_confidence = fused_cost_depth(
            ref_feature, warped_vols, self.cr_w[stage_idx], dv_reg, dv_const)
        return {"depth": depth, "photometric_confidence": photometric_confidence}

    # ---- forward ----------------------------------------------------------
    def __call__(self, imgs, proj_matrices, depth_values):
        depth_min = float(depth_values[0, 0])
        depth_max = float(depth_values[0, -1])
        depth_interval = (depth_max - depth_min) / depth_values.shape[1]
        B, V, _, Hi, Wi = imgs.shape
        features = [self.feature(imgs[:, v]) for v in range(V)]

        outputs = {}
        depth = None
        for stage_idx in range(self.num_stage):
            nd = self.ndepths[stage_idx]
            features_stage = [feat[f"stage{stage_idx + 1}"] for feat in features]
            proj_stage = proj_matrices[f"stage{stage_idx + 1}"]
            fh, fw = features_stage[0].shape[-2:]

            if depth is None:
                # Stage 1: spatially-constant hypotheses.  Pass a compact
                # (B, nd, 1) array to the fused kernel and broadcast in-kernel.
                dmin = depth_values[:, 0]
                dmax = depth_values[:, -1]
                step = (dmax - dmin) / (nd - 1)
                dv_c = (dmin[:, None]
                        + jnp.arange(nd, dtype=jnp.float32)[None, :] * step[:, None])
                dv_full = jnp.broadcast_to(dv_c[:, :, None, None], (B, nd, fh, fw))
                dv_reg = dv_c[:, :, None]                      # (B, nd, 1)
                dv_const = True
            else:
                cur_depth = lax.stop_gradient(depth)           # grad_method='detach'
                cur_depth = jax.image.resize(cur_depth, (B, Hi, Wi),
                                             method="bilinear", antialias=False)
                drs = get_depth_range_samples(
                    cur_depth, nd,
                    self.depth_intervals_ratio[stage_idx] * depth_interval,
                    [B, Hi, Wi], depth_max, depth_min)
                dv_full = jax.image.resize(drs, (B, nd, fh, fw),
                                           method="trilinear", antialias=False)
                dv_reg = dv_full.reshape(B, nd, fh * fw)
                dv_const = False

            outputs_stage = self.depth_net(features_stage, proj_stage, dv_full,
                                           dv_reg, dv_const, nd, stage_idx)
            depth = outputs_stage["depth"]
            outputs[f"stage{stage_idx + 1}"] = outputs_stage
            outputs.update(outputs_stage)
        return outputs


if __name__ == "__main__":
    key = jax.random.PRNGKey(0)
    k_img, k_model = jax.random.split(key)
    B, V, Hi, Wi = 1, 2, 16, 16
    D_init = 8

    imgs = jax.random.uniform(k_img, (B, V, 3, Hi, Wi), jnp.float32)
    depth_min, depth_max = 2.0, 6.0
    depth_values = jnp.broadcast_to(
        jnp.linspace(depth_min, depth_max, D_init, dtype=jnp.float32)[None, :],
        (B, D_init))

    # proj[:, 0] = 4x4 extrinsic, proj[:, 1, :3, :3] = intrinsics (scaled per stage)
    def make_proj(scale, tx):
        K = jnp.array([[8.0 / scale, 0.0, 8.0 / scale, 0.0],
                       [0.0, 8.0 / scale, 8.0 / scale, 0.0],
                       [0.0, 0.0, 1.0, 0.0],
                       [0.0, 0.0, 0.0, 1.0]], jnp.float32)
        E = jnp.eye(4, dtype=jnp.float32).at[0, 3].set(tx)
        return jnp.stack([E, K], axis=0)

    proj_matrices = {}
    for s, scale in zip(range(1, 4), (4.0, 2.0, 1.0)):
        views = jnp.stack([make_proj(scale, 0.0), make_proj(scale, 0.2)], axis=0)
        proj_matrices[f"stage{s}"] = jnp.broadcast_to(views[None], (B, V, 2, 4, 4))

    model = CascadeMVSNetPallas(k_model, ndepths=[8, 4, 4],
                                depth_intervals_ratio=[4, 2, 1])
    outputs = model(imgs, proj_matrices, depth_values)
    jax.block_until_ready(outputs["depth"])
    jax.block_until_ready(outputs["photometric_confidence"])

    assert outputs["depth"].shape == (B, Hi, Wi)
    assert outputs["photometric_confidence"].shape == (B, Hi, Wi)
    assert outputs["stage1"]["depth"].shape == (B, Hi // 4, Wi // 4)
    assert outputs["stage2"]["depth"].shape == (B, Hi // 2, Wi // 2)
    assert outputs["stage3"]["depth"].shape == (B, Hi, Wi)
    print("KERNEL_OK")
</pallas_src>

<mosaic_0001>
module attributes {stable_mosaic.version = 11 : i64} {
  func.func @kernel(%arg0: i32, %arg1: memref<32x3xf32, #tpu.memory_space<vmem>>, %arg2: memref<32x1xf32, #tpu.memory_space<vmem>>, %arg3: memref<3x16xf32, #tpu.memory_space<vmem>>, %arg4: memref<32x16xf32, #tpu.memory_space<vmem>>) attributes {dimension_semantics = [#tpu.dimension_semantics<parallel>], iteration_bounds = array<i64: 1>, scalar_prefetch = 0 : i64, scratch_operands = 0 : i64, tpu.core_type = #tpu.core_type<tc>, window_params = [{pipeline_mode = #tpu.pipeline_mode<synchronous>, transform_indices = @transform_0, window_bounds = array<i64: 32, 3>}, {pipeline_mode = #tpu.pipeline_mode<synchronous>, transform_indices = @transform_1, window_bounds = array<i64: 32, 1>}, {transform_indices = @transform_2, window_bounds = array<i64: 3, 16>}, {transform_indices = @transform_3, window_bounds = array<i64: 32, 16>}]} {
    %c0 = arith.constant 0 : index
    %c0_0 = arith.constant 0 : index
    %0 = vector.load %arg1[%c0, %c0_0] : memref<32x3xf32, #tpu.memory_space<vmem>>, vector<32x3xf32>
    %c0_1 = arith.constant 0 : index
    %c0_2 = arith.constant 0 : index
    %1 = vector.load %arg3[%c0_1, %c0_2] : memref<3x16xf32, #tpu.memory_space<vmem>>, vector<3x16xf32>
    %cst = arith.constant dense<0.000000e+00> : vector<32x16xf32>
    %2 = tpu.matmul %0, %1, %cst {dimension_numbers = #tpu.dot_dimension_numbers<[1], [0], [0], [1], [0, 0, 1, 1], [], []>} : vector<32x3xf32>, vector<3x16xf32>, vector<32x16xf32> -> vector<32x16xf32>
    %c0_3 = arith.constant 0 : index
    %c0_4 = arith.constant 0 : index
    %3 = vector.load %arg2[%c0_3, %c0_4] : memref<32x1xf32, #tpu.memory_space<vmem>>, vector<32x1xf32>
    %4 = vector.broadcast %3 : vector<32x1xf32> to vector<32x16xf32>
    %5 = arith.addf %2, %4 : vector<32x16xf32>
    %cst_5 = arith.constant 0.000000e+00 : f32
    %6 = vector.broadcast %cst_5 : f32 to vector<32x16xf32>
    %7 = arith.maximumf %5, %6 : vector<32x16xf32>
    %c0_6 = arith.constant 0 : index
    %c0_7 = arith.constant 0 : index
    %8 = vector.load %arg4[%c0_6, %c0_7] : memref<32x16xf32, #tpu.memory_space<vmem>>, vector<32x16xf32>
    tpu.vector_store %arg4[%c0_6, %c0_7], %7 {strides = array<i32>} : memref<32x16xf32, #tpu.memory_space<vmem>>, vector<32x16xf32>,
    return
  }
  func.func @transform_0(%arg0: i32) -> (i32, i32) {
    %c0_i32 = arith.constant 0 : i32
    %c0_i32_0 = arith.constant 0 : i32
    %c0_i32_1 = arith.constant 0 : i32
    return %c0_i32, %c0_i32_0 : i32, i32
  }
  func.func @transform_1(%arg0: i32) -> (i32, i32) {
    %c0_i32 = arith.constant 0 : i32
    %c0_i32_0 = arith.constant 0 : i32
    %c0_i32_1 = arith.constant 0 : i32
    return %c0_i32, %c0_i32_0 : i32, i32
  }
  func.func @transform_2(%arg0: i32) -> (i32, i32) {
    %c0_i32 = arith.constant 0 : i32
    %c0_i32_0 = arith.constant 0 : i32
    return %c0_i32, %arg0 : i32, i32
  }
  func.func @transform_3(%arg0: i32) -> (i32, i32) {
    %c0_i32 = arith.constant 0 : i32
    %c0_i32_0 = arith.constant 0 : i32
    return %c0_i32, %arg0 : i32, i32
  }
}

</mosaic_0001>

<bundles_post_ra>
// kernel: tpu_custom_call.1
= control target key start
LH: loop header
LB: loop body
LE: loop exit
PB: predicated region body
PF: predicated region fallthrough
CT: control target
= control target key end

     0   :  { %vm56_vm0 = vcmask 1042432   ;;  %vm43_vm1 = vcmask 23552   ;;  %v181_v3 = vmov 0   ;;  %vm149_vm2 = vcmask 130048   ;;  %s245_s2 = inlined_call_operand.vmem [shape: f32[3,16], index: 2, kind: input, shape index: {}]   ;;  %s246_s0 = inlined_call_operand.vmem [shape: f32[32,3], index: 0, kind: input, shape index: {}]   ;;  %s247_s1 = inlined_call_operand.vmem [shape: f32[32,1], index: 1, kind: input, shape index: {}]   ;;  %s248_s3 = inlined_call_operand.vmem [shape: f32[32,16], index: 3, kind: output, shape index: {}]  }
   0x1   :  { %v18_v0 = vld [vmem:[%s245_s2] sm:$0x7]  ;;  %v16_v2 = vld [vmem:[%s246_s0 + $0x10] sm:$0xff]  ;;  %180 = vset.pattern.permute.xlu1 %v181_v3  ;;  %179 = vset.pattern.permute.xlu0 %v181_v3  ;;  %v15_v4 = vld [vmem:[%s246_s0 + $0x8] sm:$0xff] }
   0x2   :  { %v14_v1 = vld [vmem:[%s246_s0] sm:$0xff]  ;;  %168 = vmatprep.subr.msk.mxu0 %vm56_vm0, %v18_v0  ;;  %176 = vmatprep.subr.msk.mxu1 %vm56_vm0, %v18_v0  ;;  %v17_v5 = vld [vmem:[%s246_s0 + $0x18] sm:$0xff]  ;;  %v21_v6 = vld [vmem:[%s247_s1 + $0x10] sm:$0xff] }
   0x3   :  { %169 = vmatpush3.msk.msra.mxu0 %vm56_vm0, %v18_v0  ;;  %177 = vmatpush3.msk.msra.mxu1 %vm56_vm0, %v18_v0  ;;  %v19_v7 = vld [vmem:[%s247_s1] sm:$0xff]  ;;  %v22_v8 = vld [vmem:[%s247_s1 + $0x18] sm:$0xff]  ;;  %v20_v9 = vld [vmem:[%s247_s1 + $0x8] sm:$0xff] }
   0x4   :  { %170 = vmatprep.mubr.msk.f32.mxu0 %vm43_vm1, %v14_v1  ;;  %173 = vmatprep.mubr.msk.f32.mxu1 %vm43_vm1, %v16_v2 }
   0x5   :  { %171 = vmatmul.mubr.msk.f32.vlgmr.msra.gmra.mxu0 %vm43_vm1, %v15_v4  ;;  %174 = vmatmul.mubr.msk.f32.vlgmr.msra.gmra.mxu1 %vm43_vm1, %v17_v5 }
   0x6   :  { %35 = vperm.xlu1 %180, %v21_v6   ;;  %25 = vperm.xlu0 %179, %v19_v7  }
   0xa   :  { %40 = vperm.xlu1 %180, %v22_v8   ;;  %30 = vperm.xlu0 %179, %v20_v9  }
  0x81   :  { %v36_v10 = vpop.permute.xlu1 %35  ;;  %v26_v11 = vpop.permute.xlu0 %25 }
  0x85   :  { %v41_v12 = vpop.permute.xlu1 %40  ;;  %v31_v13 = vpop.permute.xlu0 %30 }
  0xc5   :  { %v172_v14 = vpop.f32.mrf.mxu0  ;;  %v175_v15 = vpop.f32.mrf.mxu1 }
  0xc6   :  { %v132_v16 = vadd.f32 %v172_v14, %v31_v13  ;;  %v142_v17 = vadd.f32 %v175_v15, %v41_v12 }
  0xc7   :  { %v126_v18 = vpop.f32.mrf.mxu0  ;;  %v136_v19 = vpop.f32.mrf.mxu1 }
  0xc8   :  { %v146_v20 = vmax.f32 %v132_v16, 0.0  ;;  %v148_v21 = vmax.f32 %v142_v17, 0.0  ;;  %v127_v22 = vadd.f32 %v126_v18, %v26_v11  ;;  %v137_v23 = vadd.f32 %v136_v19, %v36_v10 }
  0xca   :  { %151 = vst.msk [vmem:[%s248_s3 + $0x8] sm:$0xff] %vm149_vm2, %v146_v20  ;;  %153 = vst.msk [vmem:[%s248_s3 + $0x18] sm:$0xff] %vm149_vm2, %v148_v21  ;;  %v145_v24 = vmax.f32 %v127_v22, 0.0  ;;  %v147_v25 = vmax.f32 %v137_v23, 0.0 }
  0xcc   :  { %150 = vst.msk [vmem:[%s248_s3] sm:$0xff] %vm149_vm2, %v145_v24  ;;  %152 = vst.msk [vmem:[%s248_s3 + $0x10] sm:$0xff] %vm149_vm2, %v147_v25 }

</bundles_post_ra>
